<compile_context>
chip_gen: v5e
topology: v5e:2x2
jax: 0.10.0
libtpu: 0.0.40
codegen_flags: <defaults>
</compile_context>

<pallas_src>
import random
import numpy as np
import jax
import jax.numpy as jnp
from jax.experimental import pallas as pl
from jax.experimental.pallas import tpu as pltpu


# ------------------------------ fused kernel ------------------------------- #

def _quantize_u8(v):
    """PIL-style float -> uint8 quantisation (round-half-up, clamp), kept in f32."""
    return jnp.clip(jnp.floor(v + 0.5), 0.0, 255.0)


def _plane_kernel(offs_ref, x_ref, wy1_ref, wx1t_ref, wy2p_ref, wx2pt_ref,
                  ndr_ref, ndct_ref, img_ref, msk_ref):
    """One program = one plane through the whole pipeline.

    offs_ref : (2,) int32 SMEM      [start_y, start_x], each in {0, 1}
    x_ref    : (H_in, W_in) uint8   raw plane (img channel or mask)
    wy1_ref  : (size, H_in)         step-1 row resize
    wx1t_ref : (W_in, size)         step-1 col resize (transposed)
    wy2p_ref : (size, size)         step-3 row resize, zero last row
    wx2pt_ref: (size, size)         step-3 col resize (transposed), zero last col
    ndr_ref  : (s8, size)           step-5 nearest row downsample
    ndct_ref : (size, s8)           step-5 nearest col downsample (transposed) / 255
    img_ref  : (size, size) uint8   pasted canvas
    msk_ref  : (s8, s8)   float32   /255 + nearest-downsampled canvas
    """
    f32 = jnp.float32
    cd = wy1_ref.dtype                       # compute dtype (f32 here; bf16 at prod)

    x = x_ref[...].astype(jnp.int32).astype(cd)                          # u8 -> cd

    # --- stage 1: bilinear resize to (size, size), uint8 epilogue ---
    y = jnp.dot(wy1_ref[...], x, preferred_element_type=f32)             # (size, W_in)
    y = jnp.dot(y.astype(cd), wx1t_ref[...], preferred_element_type=f32) # (size, size)
    y = _quantize_u8(y)

    # --- stage 2: resize to (size-1,)*2 computed into a zero-padded (size, size)
    #     slab (padded weight rows/cols are zero), uint8 epilogue ---
    z = jnp.dot(wy2p_ref[...], y.astype(cd), preferred_element_type=f32)   # (size, size)
    z = jnp.dot(z.astype(cd), wx2pt_ref[...], preferred_element_type=f32)  # (size, size)
    z = _quantize_u8(z)

    # --- stage 3: paste into the zero canvas at (start_y, start_x) in {0,1}^2.
    # The last row/col of z are exactly zero, so a circular roll by 1 equals the
    # zero-filled shift of the paste; blend with the offset flag (exact, no MXU).
    sy = (offs_ref[0] > 0).astype(f32)
    sx = (offs_ref[1] > 0).astype(f32)
    z = sy * jnp.roll(z, 1, axis=0) + (1.0 - sy) * z
    z = sx * jnp.roll(z, 1, axis=1) + (1.0 - sx) * z

    img_ref[...] = z.astype(jnp.int32).astype(jnp.uint8)

    # --- stage 4 (mask path): /255 folded into ndct, nearest downsample.
    # Computed for every plane (img-plane results are discarded host-side; the
    # extra work is s8*size*size MACs per plane, negligible vs. the resizes).
    m = jnp.dot(ndr_ref[...], z.astype(cd), preferred_element_type=f32)    # (s8, size)
    msk_ref[...] = jnp.dot(m.astype(cd), ndct_ref[...],
                           preferred_element_type=f32).astype(msk_ref.dtype)


def _fused_pallas_call(offs, planes_u8, weights, *, size, compute_dtype):
    wy1, wx1t, wy2p, wx2pt, ndr, ndct = weights
    C, H_in, W_in = planes_u8.shape
    s8 = size // 8

    def _inv(c, offs_ref):            # grid-invariant weights: fetched once
        return (0, 0)

    in_specs = [
        pl.BlockSpec((None, H_in, W_in), lambda c, offs_ref: (c, 0, 0)),
        pl.BlockSpec(wy1.shape, _inv),
        pl.BlockSpec(wx1t.shape, _inv),
        pl.BlockSpec(wy2p.shape, _inv),
        pl.BlockSpec(wx2pt.shape, _inv),
        pl.BlockSpec(ndr.shape, _inv),
        pl.BlockSpec(ndct.shape, _inv),
    ]
    out_specs = (
        pl.BlockSpec((None, size, size), lambda c, offs_ref: (c, 0, 0)),
        pl.BlockSpec((None, s8, s8), lambda c, offs_ref: (c, 0, 0)),
    )
    out_shape = (jax.ShapeDtypeStruct((C, size, size), jnp.uint8),
                 jax.ShapeDtypeStruct((C, s8, s8), jnp.float32))

    # VMEM budget: double-buffered plane/canvas blocks + resident weights +
    # in-kernel f32 intermediates; clamped to stay inside v7x's 64 MiB per-TC VMEM
    # and above v5e's 16 MiB scoped default.
    w_itemsize = jnp.dtype(compute_dtype).itemsize
    weight_bytes = sum(int(np.prod(w.shape)) * w_itemsize for w in weights)
    io_bytes = 2 * (H_in * W_in + size * size + s8 * s8 * 4)   # double-buffered
    interm_bytes = 6 * size * size * 4
    vmem_limit = int(min(max(2 * (weight_bytes + io_bytes + interm_bytes),
                             16 << 20), 56 << 20))

    grid_spec = pltpu.PrefetchScalarGridSpec(
        num_scalar_prefetch=1,
        grid=(C,),
        in_specs=in_specs,
        out_specs=out_specs,
    )
    return pl.pallas_call(
        _plane_kernel,
        grid_spec=grid_spec,
        out_shape=out_shape,
        compiler_params=pltpu.CompilerParams(
            dimension_semantics=("parallel",),
            vmem_limit_bytes=vmem_limit),
    )(offs, planes_u8, wy1, wx1t, wy2p, wx2pt, ndr, ndct)


# -------------------- deterministic weight constructors -------------------- #

def bilinear_weights(out_size, in_size):
    """Separable bilinear-resize weight matrix (align_corners=False)."""
    w = np.zeros((out_size, in_size), dtype=np.float32)
    if in_size == 1:
        w[:, 0] = 1.0
        return w
    scale = in_size / out_size
    for i in range(out_size):
        src = (i + 0.5) * scale - 0.5
        i0 = int(np.floor(src))
        frac = src - i0
        i0c = min(max(i0, 0), in_size - 1)
        i1c = min(max(i0 + 1, 0), in_size - 1)
        w[i, i0c] += 1.0 - frac
        w[i, i1c] += frac
    return w
    # TODO(synk): PIL's antialiased (area) downscale filter is not reproduced
    #             exactly; this is standard bilinear (torch antialias=False).


def nearest_weights(out_size, in_size):
    """One-hot nearest-neighbour downsample weights (cv2 INTER_NEAREST style)."""
    w = np.zeros((out_size, in_size), dtype=np.float32)
    scale = in_size / out_size
    for i in range(out_size):
        w[i, min(int(i * scale), in_size - 1)] = 1.0
    return w


_WEIGHT_CACHE = {}


def _get_weights(size, H_in, W_in, compute_dtype):
    """Sample-independent weights, cached as device arrays (no per-sample numpy
    loops, no per-sample host->device uploads)."""
    key = (int(size), int(H_in), int(W_in), jnp.dtype(compute_dtype).name)
    if key not in _WEIGHT_CACHE:
        new = size - 1
        s8 = size // 8
        wy1 = bilinear_weights(size, H_in)                        # (size, H_in)
        wx1t = bilinear_weights(size, W_in).T                     # (W_in, size)
        wy2p = np.zeros((size, size), np.float32)                 # zero last row
        wy2p[:new, :] = bilinear_weights(new, size)
        wx2pt = np.zeros((size, size), np.float32)                # zero last col
        wx2pt[:, :new] = bilinear_weights(new, size).T
        ndr = nearest_weights(s8, size)                           # (s8, size)
        ndct = nearest_weights(s8, size).T / np.float32(255.0)    # (size, s8)
        _WEIGHT_CACHE[key] = tuple(
            jnp.asarray(w, dtype=compute_dtype)
            for w in (wy1, wx1t, wy2p, wx2pt, ndr, ndct))
    return _WEIGHT_CACHE[key]


# ----------------------------- forward wrapper ----------------------------- #

def random_resize_crop(img_hwc_u8, masks_nhw_u8, size=16, crop_p=0.5, seed=0,
                       compute_dtype=jnp.float32):
    """Deterministic (seeded) re-implementation of RandomResizeCrop.forward.

    img_hwc_u8 : (H, W, 3) uint8   masks_nhw_u8 : (N, H, W) uint8
    Returns (res_img (size,size,3) uint8, res_mask (N, size//8, size//8) f32).
    compute_dtype: use jnp.bfloat16 for MXU operands at production sizes
    (accumulation stays f32; pixel values 0..255 are exact in bf16).
    """
    rng = random.Random(seed)            # replaces the module's global `random`
    H_in, W_in, n_img = img_hwc_u8.shape
    n_mask = int(masks_nhw_u8.shape[0])
    new = size - 1

    # pack raw uint8 planes as (C, H, W); the u8->float cast happens in-kernel.
    planes = jnp.concatenate(
        [jnp.transpose(img_hwc_u8, (2, 0, 1)), masks_nhw_u8], axis=0)

    # --- RNG stream ---------------------------------------------------------
    # step 1: F.resize(img/masks, size) -- no draws.
    # TODO(synk): F.resize(img, int) is shorter-edge / aspect-preserving with PIL
    #             antialiasing; approximated as a plain square bilinear resize,
    #             which also makes every step-2 crop branch the identity.
    # step 2: crop branch -- image is already (size, size), so every branch is the
    # identity; draws are still consumed for stream fidelity.
    if rng.random() < crop_p:
        if n_mask > 0:
            rng.randint(0, 0)            # PairRandomCrop x
            rng.randint(0, 0)            # PairRandomCrop y
    # step 4: paste offsets.  Original samples randint(0, 1024 - new), which only
    # stays inside the (size, size) canvas when size == 1025; we sample the valid
    # range [0, size - new] = {0, 1} (documented divergence / latent-bug fix).
    start_y = rng.randint(0, size - new)
    start_x = rng.randint(0, size - new)
    offs = jnp.asarray([start_y, start_x], dtype=jnp.int32)

    weights = _get_weights(size, H_in, W_in, compute_dtype)

    canvases, mask_ds = _fused_pallas_call(offs, planes, weights,
                                           size=size, compute_dtype=compute_dtype)

    res_img = jnp.transpose(canvases[:n_img], (1, 2, 0))   # (size, size, 3) uint8
    res_mask = mask_ds[n_img:]                             # (N, s8, s8) float32
    return res_img, res_mask


# ---------------------------------- main ----------------------------------- #

if __name__ == "__main__":
    key = jax.random.PRNGKey(0)
    k_img, k_msk = jax.random.split(key)

    size = 16                     # module's `size` (so size//8 == 2)
    H_in, W_in = 24, 20           # small PIL-like input
    n_masks = 2

    img = jax.random.randint(k_img, (H_in, W_in, 3), 0, 256, dtype=jnp.int32)
    img = img.astype(jnp.uint8)
    masks = (jax.random.randint(k_msk, (n_masks, H_in, W_in), 0, 2,
                                dtype=jnp.int32) * 255).astype(jnp.uint8)

    res_img, res_mask = random_resize_crop(img, masks, size=size,
                                           crop_p=0.5, seed=0)
    jax.block_until_ready(res_img)
    jax.block_until_ready(res_mask)

    assert res_img.shape == (size, size, 3) and res_img.dtype == jnp.uint8
    assert res_mask.shape == (n_masks, size // 8, size // 8)
    assert res_mask.dtype == jnp.float32
    print("KERNEL_OK")
</pallas_src>

<mosaic_0001>
module attributes {stable_mosaic.version = 11 : i64} {
  func.func @_plane_kernel(%arg0: i32, %arg1: memref<2xi32, #tpu.memory_space<smem>>, %arg2: memref<1x24x20xi8, #tpu.memory_space<vmem>>, %arg3: memref<16x24xf32, #tpu.memory_space<vmem>>, %arg4: memref<20x16xf32, #tpu.memory_space<vmem>>, %arg5: memref<16x16xf32, #tpu.memory_space<vmem>>, %arg6: memref<16x16xf32, #tpu.memory_space<vmem>>, %arg7: memref<2x16xf32, #tpu.memory_space<vmem>>, %arg8: memref<16x2xf32, #tpu.memory_space<vmem>>, %arg9: memref<1x16x16xi8, #tpu.memory_space<vmem>>, %arg10: memref<1x2x2xf32, #tpu.memory_space<vmem>>) attributes {dimension_semantics = [#tpu.dimension_semantics<parallel>], iteration_bounds = array<i64: 5>, scalar_prefetch = 1 : i64, scratch_operands = 0 : i64, tpu.core_type = #tpu.core_type<tc>, window_params = [{transform_indices = @transform_0, window_bounds = array<i64: 1, 24, 20>}, {pipeline_mode = #tpu.pipeline_mode<synchronous>, transform_indices = @transform_1, window_bounds = array<i64: 16, 24>}, {pipeline_mode = #tpu.pipeline_mode<synchronous>, transform_indices = @transform_2, window_bounds = array<i64: 20, 16>}, {pipeline_mode = #tpu.pipeline_mode<synchronous>, transform_indices = @transform_3, window_bounds = array<i64: 16, 16>}, {pipeline_mode = #tpu.pipeline_mode<synchronous>, transform_indices = @transform_4, window_bounds = array<i64: 16, 16>}, {pipeline_mode = #tpu.pipeline_mode<synchronous>, transform_indices = @transform_5, window_bounds = array<i64: 2, 16>}, {pipeline_mode = #tpu.pipeline_mode<synchronous>, transform_indices = @transform_6, window_bounds = array<i64: 16, 2>}, {transform_indices = @transform_7, window_bounds = array<i64: 1, 16, 16>}, {transform_indices = @transform_8, window_bounds = array<i64: 1, 2, 2>}]} {
    %c0 = arith.constant 0 : index
    %c0_0 = arith.constant 0 : index
    %c0_1 = arith.constant 0 : index
    %0 = vector.load %arg2[%c0, %c0_0, %c0_1] : memref<1x24x20xi8, #tpu.memory_space<vmem>>, vector<1x24x20xi8>
    %1 = vector.shape_cast %0 : vector<1x24x20xi8> to vector<24x20xi8>
    %2 = arith.extui %1 : vector<24x20xi8> to vector<24x20xi32>
    %3 = arith.sitofp %2 : vector<24x20xi32> to vector<24x20xf32>
    %c0_2 = arith.constant 0 : index
    %c0_3 = arith.constant 0 : index
    %4 = vector.load %arg3[%c0_2, %c0_3] : memref<16x24xf32, #tpu.memory_space<vmem>>, vector<16x24xf32>
    %cst = arith.constant dense<0.000000e+00> : vector<16x20xf32>
    %5 = tpu.matmul %4, %3, %cst {dimension_numbers = #tpu.dot_dimension_numbers<[1], [0], [0], [1], [0, 0, 1, 1], [], []>} : vector<16x24xf32>, vector<24x20xf32>, vector<16x20xf32> -> vector<16x20xf32>
    %c0_4 = arith.constant 0 : index
    %c0_5 = arith.constant 0 : index
    %6 = vector.load %arg4[%c0_4, %c0_5] : memref<20x16xf32, #tpu.memory_space<vmem>>, vector<20x16xf32>
    %cst_6 = arith.constant dense<0.000000e+00> : vector<16x16xf32>
    %7 = tpu.matmul %5, %6, %cst_6 {dimension_numbers = #tpu.dot_dimension_numbers<[1], [0], [0], [1], [0, 0, 1, 1], [], []>} : vector<16x20xf32>, vector<20x16xf32>, vector<16x16xf32> -> vector<16x16xf32>
    %cst_7 = arith.constant 5.000000e-01 : f32
    %8 = vector.broadcast %cst_7 : f32 to vector<16x16xf32>
    %9 = arith.addf %7, %8 : vector<16x16xf32>
    %10 = math.floor %9 : vector<16x16xf32>
    %cst_8 = arith.constant 0.000000e+00 : f32
    %cst_9 = arith.constant 2.550000e+02 : f32
    %11 = vector.broadcast %cst_8 : f32 to vector<16x16xf32>
    %12 = arith.maximumf %11, %10 : vector<16x16xf32>
    %13 = vector.broadcast %cst_9 : f32 to vector<16x16xf32>
    %14 = arith.minimumf %13, %12 : vector<16x16xf32>
    %c0_10 = arith.constant 0 : index
    %c0_11 = arith.constant 0 : index
    %15 = vector.load %arg5[%c0_10, %c0_11] : memref<16x16xf32, #tpu.memory_space<vmem>>, vector<16x16xf32>
    %cst_12 = arith.constant dense<0.000000e+00> : vector<16x16xf32>
    %16 = tpu.matmul %15, %14, %cst_12 {dimension_numbers = #tpu.dot_dimension_numbers<[1], [0], [0], [1], [0, 0, 1, 1], [], []>} : vector<16x16xf32>, vector<16x16xf32>, vector<16x16xf32> -> vector<16x16xf32>
    %c0_13 = arith.constant 0 : index
    %c0_14 = arith.constant 0 : index
    %17 = vector.load %arg6[%c0_13, %c0_14] : memref<16x16xf32, #tpu.memory_space<vmem>>, vector<16x16xf32>
    %cst_15 = arith.constant dense<0.000000e+00> : vector<16x16xf32>
    %18 = tpu.matmul %16, %17, %cst_15 {dimension_numbers = #tpu.dot_dimension_numbers<[1], [0], [0], [1], [0, 0, 1, 1], [], []>} : vector<16x16xf32>, vector<16x16xf32>, vector<16x16xf32> -> vector<16x16xf32>
    %cst_16 = arith.constant 5.000000e-01 : f32
    %19 = vector.broadcast %cst_16 : f32 to vector<16x16xf32>
    %20 = arith.addf %18, %19 : vector<16x16xf32>
    %21 = math.floor %20 : vector<16x16xf32>
    %cst_17 = arith.constant 0.000000e+00 : f32
    %cst_18 = arith.constant 2.550000e+02 : f32
    %22 = vector.broadcast %cst_17 : f32 to vector<16x16xf32>
    %23 = arith.maximumf %22, %21 : vector<16x16xf32>
    %24 = vector.broadcast %cst_18 : f32 to vector<16x16xf32>
    %25 = arith.minimumf %24, %23 : vector<16x16xf32>
    %c0_19 = arith.constant 0 : index
    %26 = memref.load %arg1[%c0_19] : memref<2xi32, #tpu.memory_space<smem>>
    %c0_i32 = arith.constant 0 : i32
    %27 = arith.cmpi sgt, %26, %c0_i32 : i32
    %28 = arith.extui %27 : i1 to i32
    %29 = arith.sitofp %28 : i32 to f32
    %c1 = arith.constant 1 : index
    %30 = memref.load %arg1[%c1] : memref<2xi32, #tpu.memory_space<smem>>
    %c0_i32_20 = arith.constant 0 : i32
    %31 = arith.cmpi sgt, %30, %c0_i32_20 : i32
    %32 = arith.extui %31 : i1 to i32
    %33 = arith.sitofp %32 : i32 to f32
    %34 = vector.extract_strided_slice %25 {offsets = [15, 0], sizes = [1, 16], strides = [1, 1]} : vector<16x16xf32> to vector<1x16xf32>
    %35 = vector.extract_strided_slice %25 {offsets = [0, 0], sizes = [15, 16], strides = [1, 1]} : vector<16x16xf32> to vector<15x16xf32>
    %36 = tpu.concatenate %34, %35 in 0 : vector<1x16xf32>, vector<15x16xf32> -> vector<16x16xf32>
    %37 = vector.broadcast %29 : f32 to vector<16x16xf32>
    %38 = arith.mulf %37, %36 : vector<16x16xf32>
    %cst_21 = arith.constant 1.000000e+00 : f32
    %39 = arith.subf %cst_21, %29 : f32
    %40 = vector.broadcast %39 : f32 to vector<16x16xf32>
    %41 = arith.mulf %40, %25 : vector<16x16xf32>
    %42 = arith.addf %38, %41 : vector<16x16xf32>
    %43 = vector.extract_strided_slice %42 {offsets = [0, 15], sizes = [16, 1], strides = [1, 1]} : vector<16x16xf32> to vector<16x1xf32>
    %44 = vector.extract_strided_slice %42 {offsets = [0, 0], sizes = [16, 15], strides = [1, 1]} : vector<16x16xf32> to vector<16x15xf32>
    %45 = tpu.concatenate %43, %44 in 1 : vector<16x1xf32>, vector<16x15xf32> -> vector<16x16xf32>
    %46 = vector.broadcast %33 : f32 to vector<16x16xf32>
    %47 = arith.mulf %46, %45 : vector<16x16xf32>
    %cst_22 = arith.constant 1.000000e+00 : f32
    %48 = arith.subf %cst_22, %33 : f32
    %49 = vector.broadcast %48 : f32 to vector<16x16xf32>
    %50 = arith.mulf %49, %42 : vector<16x16xf32>
    %51 = arith.addf %47, %50 : vector<16x16xf32>
    %52 = arith.fptosi %51 : vector<16x16xf32> to vector<16x16xi32>
    %53 = arith.trunci %52 : vector<16x16xi32> to vector<16x16xi8>
    %c0_23 = arith.constant 0 : index
    %c0_24 = arith.constant 0 : index
    %c0_25 = arith.constant 0 : index
    %54 = vector.load %arg9[%c0_23, %c0_24, %c0_25] : memref<1x16x16xi8, #tpu.memory_space<vmem>>, vector<1x16x16xi8>
    %55 = vector.shape_cast %54 : vector<1x16x16xi8> to vector<16x16xi8>
    %56 = vector.shape_cast %53 : vector<16x16xi8> to vector<1x16x16xi8>
    tpu.vector_store %arg9[%c0_23, %c0_24, %c0_25], %56 {strides = array<i32>} : memref<1x16x16xi8, #tpu.memory_space<vmem>>, vector<1x16x16xi8>,
    %c0_26 = arith.constant 0 : index
    %c0_27 = arith.constant 0 : index
    %57 = vector.load %arg7[%c0_26, %c0_27] : memref<2x16xf32, #tpu.memory_space<vmem>>, vector<2x16xf32>
    %cst_28 = arith.constant dense<0.000000e+00> : vector<2x16xf32>
    %58 = tpu.matmul %57, %51, %cst_28 {dimension_numbers = #tpu.dot_dimension_numbers<[1], [0], [0], [1], [0, 0, 1, 1], [], []>} : vector<2x16xf32>, vector<16x16xf32>, vector<2x16xf32> -> vector<2x16xf32>
    %c0_29 = arith.constant 0 : index
    %c0_30 = arith.constant 0 : index
    %59 = vector.load %arg8[%c0_29, %c0_30] : memref<16x2xf32, #tpu.memory_space<vmem>>, vector<16x2xf32>
    %cst_31 = arith.constant dense<0.000000e+00> : vector<2x2xf32>
    %60 = tpu.matmul %58, %59, %cst_31 {dimension_numbers = #tpu.dot_dimension_numbers<[1], [0], [0], [1], [0, 0, 1, 1], [], []>} : vector<2x16xf32>, vector<16x2xf32>, vector<2x2xf32> -> vector<2x2xf32>
    %c0_32 = arith.constant 0 : index
    %c0_33 = arith.constant 0 : index
    %c0_34 = arith.constant 0 : index
    %61 = vector.load %arg10[%c0_32, %c0_33, %c0_34] : memref<1x2x2xf32, #tpu.memory_space<vmem>>, vector<1x2x2xf32>
    %62 = vector.shape_cast %61 : vector<1x2x2xf32> to vector<2x2xf32>
    %63 = vector.shape_cast %60 : vector<2x2xf32> to vector<1x2x2xf32>
    tpu.vector_store %arg10[%c0_32, %c0_33, %c0_34], %63 {strides = array<i32>} : memref<1x2x2xf32, #tpu.memory_space<vmem>>, vector<1x2x2xf32>,
    return
  }
  func.func @transform_0(%arg0: i32, %arg1: memref<2xi32, #tpu.memory_space<smem>>) -> (i32, i32, i32) {
    %c0_i32 = arith.constant 0 : i32
    %c0_i32_0 = arith.constant 0 : i32
    %c0_i32_1 = arith.constant 0 : i32
    return %arg0, %c0_i32, %c0_i32_0 : i32, i32, i32
  }
  func.func @transform_1(%arg0: i32, %arg1: memref<2xi32, #tpu.memory_space<smem>>) -> (i32, i32) {
    %c0_i32 = arith.constant 0 : i32
    %c0_i32_0 = arith.constant 0 : i32
    %c0_i32_1 = arith.constant 0 : i32
    return %c0_i32, %c0_i32_0 : i32, i32
  }
  func.func @transform_2(%arg0: i32, %arg1: memref<2xi32, #tpu.memory_space<smem>>) -> (i32, i32) {
    %c0_i32 = arith.constant 0 : i32
    %c0_i32_0 = arith.constant 0 : i32
    %c0_i32_1 = arith.constant 0 : i32
    return %c0_i32, %c0_i32_0 : i32, i32
  }
  func.func @transform_3(%arg0: i32, %arg1: memref<2xi32, #tpu.memory_space<smem>>) -> (i32, i32) {
    %c0_i32 = arith.constant 0 : i32
    %c0_i32_0 = arith.constant 0 : i32
    %c0_i32_1 = arith.constant 0 : i32
    return %c0_i32, %c0_i32_0 : i32, i32
  }
  func.func @transform_4(%arg0: i32, %arg1: memref<2xi32, #tpu.memory_space<smem>>) -> (i32, i32) {
    %c0_i32 = arith.constant 0 : i32
    %c0_i32_0 = arith.constant 0 : i32
    %c0_i32_1 = arith.constant 0 : i32
    return %c0_i32, %c0_i32_0 : i32, i32
  }
  func.func @transform_5(%arg0: i32, %arg1: memref<2xi32, #tpu.memory_space<smem>>) -> (i32, i32) {
    %c0_i32 = arith.constant 0 : i32
    %c0_i32_0 = arith.constant 0 : i32
    %c0_i32_1 = arith.constant 0 : i32
    return %c0_i32, %c0_i32_0 : i32, i32
  }
  func.func @transform_6(%arg0: i32, %arg1: memref<2xi32, #tpu.memory_space<smem>>) -> (i32, i32) {
    %c0_i32 = arith.constant 0 : i32
    %c0_i32_0 = arith.constant 0 : i32
    %c0_i32_1 = arith.constant 0 : i32
    return %c0_i32, %c0_i32_0 : i32, i32
  }
  func.func @transform_7(%arg0: i32, %arg1: memref<2xi32, #tpu.memory_space<smem>>) -> (i32, i32, i32) {
    %c0_i32 = arith.constant 0 : i32
    %c0_i32_0 = arith.constant 0 : i32
    %c0_i32_1 = arith.constant 0 : i32
    return %arg0, %c0_i32, %c0_i32_0 : i32, i32, i32
  }
  func.func @transform_8(%arg0: i32, %arg1: memref<2xi32, #tpu.memory_space<smem>>) -> (i32, i32, i32) {
    %c0_i32 = arith.constant 0 : i32
    %c0_i32_0 = arith.constant 0 : i32
    %c0_i32_1 = arith.constant 0 : i32
    return %arg0, %c0_i32, %c0_i32_0 : i32, i32, i32
  }
}

</mosaic_0001>

<bundles_post_ra>
// kernel: tpu_custom_call.1
= control target key start
LH: loop header
LB: loop body
LE: loop exit
PB: predicated region body
PF: predicated region fallthrough
CT: control target
= control target key end

     0   :  { %s1082_s12 = smov [#allocation3]   ;;  %s1299_s0 = inlined_call_operand.vmem [shape: s32[2], index: 0, kind: input, shape index: {}]   ;;  %s1300_s1 = inlined_call_operand.vmem [shape: u8[5,24,20], index: 1, kind: input, shape index: {}]   ;;  %s1301_s2 = inlined_call_operand.hbm [shape: f32[16,24], index: 2, kind: input, shape index: {}]   ;;  %s1302_s3 = inlined_call_operand.vmem [shape: f32[20,16], index: 3, kind: input, shape index: {}]   ;;  %s1303_s4 = inlined_call_operand.hbm [shape: f32[16,16], index: 4, kind: input, shape index: {}]   ;;  %s1304_s5 = inlined_call_operand.hbm [shape: f32[16,16], index: 5, kind: input, shape index: {}]   ;;  %s1305_s6 = inlined_call_operand.vmem [shape: f32[2,16], index: 6, kind: input, shape index: {}]   ;;  %s1306_s7 = inlined_call_operand.vmem [shape: f32[16,2], index: 7, kind: input, shape index: {}]   ;;  %s1307_s8 = inlined_call_operand.hbm [shape: u8[5,16,16], index: 8, kind: output, shape index: {0}]   ;;  %s1308_s9 = inlined_call_operand.vmem [shape: f32[5,2,2], index: 9, kind: output, shape index: {1}]  }
   0x1   :  { %1309 = sst [smem:[#allocation15_spill]] %s1300_s1  ;;  %s16_s11 = sshll.u32 %s1299_s0, 4  ;;  %s17_s11 = int_to_ptr.vmem [resolvable:$true] %s16_s11 }
   0x2   :  { %1310 = sst [smem:[#allocation16_spill]] %s1301_s2 }
   0x3   :  { %1311 = sst [smem:[#allocation17_spill]] %s1303_s4 }
   0x4   :  { %19 = dma.vmem_to_smem %s17_s11, 16, %s1082_s12, [#allocation2] }
   0x5   :  { %1052 = dma.done.wait [#allocation2], 16 }
   0x6   :  { %1053 = vsyncadd [#allocation2], 4294967280 }
   0x7   :  { %22 = sfence }
   0x8   :  { %23 = vsyncpa [#allocation5], 0 }
   0x9   :  { %24 = vsyncpa [#allocation8], 0 }
   0xa   :  { %25 = vsyncpa [#allocation6], 0 }
   0xb   :  { %27 = vsyncpa [#allocation6 + $0x1], 0  ;;  %s1145_s13 = smov 0   ;;  %s1147_s14 = smov 0  }
   0xc   :  { %s1149_s15 = smov 0   ;;  %s1151_s16 = smov 0  }
   0xd LB: > { %s1166_s0 = sadd.s32 4294967295, %s1080_s16   ;;  %s783_s17 = sadd.s32 4294967294, %s1080_s16   ;;  %s1080_s16 = sphi %s1151_s16, %s1322_s16   ;;  %s1076_s15 = sphi %s1149_s15, %s1321_s15   ;;  %s1072_s14 = sphi %s1147_s14, %s1320_s14   ;;  %s1068_s13 = sphi %s1145_s13, %s1319_s13  }
   0xe   : > { %s1170_s18 = sadd.s32 1, %s1080_s16   ;;  %s192_s19 = sadd.s32 1, %s1076_s15 }
   0xf   : > { %s189_s20 = ssub.s32 %s1080_s16, %s1170_s18  ;;  %p202_p0 = scmp.ne.s32.totalorder %s1076_s15, %s1072_s14 }
  0x10   : > { %p190_p1 = scmp.eq.s32.totalorder %s189_s20, 0  ;;  %p203_p2 = scmp.eq.s32.totalorder %s1166_s0, 4 }
  0x11   : > { %p208_p3 = scmp.ne.s32.totalorder %s1072_s14, %s1068_s13  ;;  %p209_p4 = scmp.eq.s32.totalorder %s783_s17, 4 }
  0x12   : > { %s1181_s21 = scalar_select %p190_p1, %s1076_s15, %s192_s19  }
  0x13   : > { %p1183_p5 = por %p203_p2, %p202_p0  ;;  %p1187_p6 = por %p209_p4, %p208_p3 }
  0x14   : > { %p784_p7 = scmp.ge.s32.totalorder %s1080_s16, 1  ;;  %p242_p8 = scmp.lt.s32.totalorder %s1080_s16, 6 }
  0x15   : > { %p857_p9 = scmp.eq.s32.totalorder %s1166_s0, 0  ;;  %s1315_s4 = sld [smem:[#allocation17_spill]] }
  0x16   : > { %p1194_p10 = pnand %p784_p7, %p242_p8  ;;  %s1316_s2 = sld [smem:[#allocation16_spill]] }
  0x17   : > { %s1083_s11 = smov [#allocation7]   ;;  %s1084_s17 = smov 128  }
  0x18   : > { %p843_p11 = pneg %p1194_p10  ;;  %s272_s12 = sshll.u32 %s1083_s11, 4  ;;  %s273_s12 = int_to_ptr.vmem [resolvable:$true] %s272_s12 }
  0x19   : > { %s1085_s19 = smov 8   ;;  %s1086_s20 = smov [#allocation4]  }
  0x1a   : > { %p1208_p12 = pnand %p857_p9, %p843_p11  ;;  %s255_s25 = sshll.u32 %s1086_s20, 4  ;;  %s256_s25 = int_to_ptr.vmem [resolvable:$true] %s255_s25 }
  0x1b   : > { %s270_s27 = sshll.u32 %s1315_s4, 4  ;;  %s284_s29 = sshll.u32 %s1304_s5, 4  ;;  %s271_s27 = int_to_ptr.hbm [resolvable:$true] %s270_s27  ;;  %s285_s29 = int_to_ptr.hbm [resolvable:$true] %s284_s29 }
  0x1c   : > { %s253_s30 = sshll.u32 %s1316_s2, 4  ;;  %s1087_s2 = smov [#allocation9]   ;;  %s254_s30 = int_to_ptr.hbm [resolvable:$true] %s253_s30 }
  0x1d   : > { %849 = dma.hbm_to_vmem [thread:$0]  (!%p1208_p12), %s271_s27, 256, %s273_s12, [#allocation8], %s1084_s17, %s1084_s17, %s1085_s19  }
  0x1e   : > { %846 = dma.hbm_to_vmem [thread:$0]  (!%p1208_p12), %s254_s30, 256, %s256_s25, [#allocation5], %s1084_s17, %s1084_s17, %s1085_s19  }
  0x1f   : > { %s286_s4 = sshll.u32 %s1087_s2, 4  ;;  %316 = sbr.rel (%p1194_p10) target bundleno = 1012 (0x3f4), region = 48  ;;  %s287_s4 = int_to_ptr.vmem [resolvable:$true] %s286_s4 }
  0x20   : > { %852 = dma.hbm_to_vmem [thread:$0]  (!%p1208_p12), %s285_s29, 256, %s287_s4, [#allocation8], %s1084_s17, %s1084_s17, %s1085_s19  }
  0x24   : > { %1055 = dma.done.wait (%p857_p9), [#allocation5], 256  }
  0x25   : > { %1057 = vsyncadd (%p857_p9), [#allocation5], 4294967040 }
  0x26   : > { %1059 = dma.done.wait (%p857_p9), [#allocation8], 512  }
  0x27   : > { %1061 = vsyncadd (%p857_p9), [#allocation8], 4294966784  ;;  %p365_p13 = scmp.lt.s32.totalorder %s1166_s0, 4  ;;  %s1318_s1 = sld [smem:[#allocation15_spill]]  ;;  %vm428_vm0 = vcmask 1043456   ;;  %v419_v6 = vld [vmem:[%s1302_s3 + $0x8] sm:$0xff] }
  0x28   : > { %v420_v5 = vld [vmem:[%s1302_s3 + $0x10] sm:$0xf]  ;;  %v386_v13 = vld [vmem:[#allocation4] sm:$0xff]  ;;  %vm388_vm1 = vcmask 195584   ;;  %v387_v14 = vld [vmem:[#allocation4 + $0x8] sm:$0xff]  ;;  %vm421_vm2 = vcmask 162816  }
  0x29   : > { %s1233_s2 = scalar_select %p365_p13, %s1166_s0, 4  ;;  %798 = vmatpush.msk.msra.mxu1 %vm428_vm0, %v420_v5  ;;  %v418_v15 = vld [vmem:[%s1302_s3] sm:$0xff]  ;;  %v494_v18 = vld [vmem:[#allocation9 + $0x8] sm:$0xff]  ;;  %v461_v29 = vld [vmem:[#allocation7] sm:$0xff]  ;;  %vm463_vm3 = vcmask 130048   ;;  %vm542_vm4 = vcmask 1040384  }
  0x2a   : > { %515 = vmatpush.msra.mxu3 %v494_v18  ;;  %v462_v30 = vld [vmem:[#allocation7 + $0x8] sm:$0xff]  ;;  %v493_v31 = vld [vmem:[#allocation9] sm:$0xff]  ;;  %s530_s25 = sld [smem:[#allocation3]]  ;;  %s1089_s24 = smov 1   ;;  %v617_v56 = vld [vmem:[%s1306_s7 + $0x8] sm:$0xff]  ;;  %vm571_vm5 = vcmask 7168  }
  0x2b   : > { %s818_s4 = smul.u32 6, %s1233_s2  ;;  %446 = vmatpush.msra.mxu1 %v419_v6  ;;  %s805_s27 = sld [smem:[#allocation3 + $0x1]]  ;;  %v616_v57 = vld [vmem:[%s1306_s7] sm:$0xff]  ;;  %vm589_vm8 = vcmask 123904  }
  0x2c   : > { %516 = vmatpush.msra.mxu3 %v493_v31 }
  0x2d   : > { %s369_s30 = scalar_lea.vmem %s1318_s1, %s818_s4  ;;  %447 = vmatpush.msra.mxu1 %v418_v15  ;;  %s1088_s4 = smov 113  }
  0x2e   : > { %v815_v0 = vld [vmem:[%s369_s30] sm:$0xf]   ;;  %v376_v1 = vld [vmem:[%s369_s30 + $0x4] sm:$0x3]  ;;  %635 = vmatpush.msrb.mxu3 %v617_v56 }
  0x2f   : > { %v379_v2 = vunpack.c.0.s8 %v376_v1  ;;  %v817_v3 = vunpack.c.1.s8 %v815_v0  ;;  %v816_v4 = vunpack.c.0.s8 %v815_v0 }
  0x30   : > { %p531_p0 = scmp.gt.s32.totalorder %s530_s25, 0  ;;  %636 = vmatpush.msrb.mxu3 %v616_v57 }
  0x31   : > { %v382_v7 = vand.u32 255, %v379_v2  ;;  %v381_v8 = vand.u32 255, %v817_v3  ;;  %v380_v9 = vand.u32 255, %v816_v4  ;;  %p535_p1 = scmp.gt.s32.totalorder %s805_s27, 0 }
  0x32   : > { %s532_s26 = scalar_select %p531_p0, 1, 0 }
  0x33   : > { %v385_v10 = vcvt.s32.f32 %v382_v7  ;;  %v384_v11 = vcvt.s32.f32 %v381_v8  ;;  %v383_v12 = vcvt.s32.f32 %v380_v9  ;;  %s536_s17 = scalar_select %p535_p1, 1, 0 }
  0x34   : > { %s533_s28 = scvt.s32.f32 %s532_s26 }
  0x35   : > { %408 = vmatpush.msra.mxu0 %v385_v10  ;;  %s537_s19 = scvt.s32.f32 %s536_s17  ;;  %v592_v10 = vld [vmem:[%s1305_s6] sm:$0x3] }
  0x36   : > { %s551_s29 = ssub.f32 1.0, %s533_s28  ;;  %v548_v47 = vstv %s533_s28  ;;  %s356_s28 = sand.u32 1, %s1072_s14  }
  0x37   : > { %409 = vmatpush.msra.mxu0 %v384_v11  ;;  %s577_s20 = ssub.f32 1.0, %s537_s19  ;;  %v574_v60 = vstv %s537_s19  ;;  %s644_s17 = scalar_lea.sflag [#allocation6], %s356_s28 }
  0x38   : > { %v552_v45 = vstv %s551_s29  ;;  %s793_s29 = sshll.u32 %s356_s28, 2 }
  0x39   : > { %410 = vmatpush.msra.mxu0 %v383_v12  ;;  %v578_v61 = vstv %s577_s20 }
  0x3a   : > { %796 = vmatmul.msk.f32.vlgmr.msra.gmra.mxu0 %vm388_vm1, %v386_v13 }
  0x42   : > { %797 = vmatmul.msk.f32.gmra.mxu0 %vm388_vm1, %v387_v14 }
  0xb7   : > { %v412_v16 = vpop.f32.mrf.mxu0 }
  0xb8   : > { %799 = vmatmul.msk.f32.vlgmr.msra.gmra.mxu1 %vm421_vm2, %v412_v16 }
  0xbf   : > { %v415_v17 = vpop.f32.mrf.mxu0 }
  0xc0   : > { %800 = vmatmul.msk.f32.gmra.mxu1 %vm421_vm2, %v415_v17 }
 0x135   : > { %v449_v19 = vpop.f32.mrf.mxu1 }
 0x136   : > { %v450_v20 = vadd.f32 0.5, %v449_v19 }
 0x138   : > { %v455_v22 = vfloor.f32 %v450_v20 }
 0x13a   : > { %v457_v25 = vmax.f32 %v455_v22, 0.0 }
 0x13c   : > { %v459_v28 = vmin.f32 %v457_v25, 255.0 }
 0x13d   : > { %v452_v21 = vpop.f32.mrf.mxu1 }
 0x13e   : > { %v453_v23 = vadd.f32 0.5, %v452_v21 }
 0x140   : > { %v456_v24 = vfloor.f32 %v453_v23 }
 0x142   : > { %v458_v26 = vmax.f32 %v456_v24, 0.0 }
 0x144   : > { %v460_v27 = vmin.f32 %v458_v26, 255.0 }
 0x146   : > { %484 = vmatpush.msra.mxu2 %v460_v27 }
 0x148   : > { %485 = vmatpush.msra.mxu2 %v459_v28 }
 0x149   : > { %801 = vmatmul.msk.f32.vlgmr.msra.gmra.mxu2 %vm463_vm3, %v461_v29 }
 0x151   : > { %802 = vmatmul.msk.f32.gmra.mxu2 %vm463_vm3, %v462_v30 }
 0x1cc   : > { %v487_v32 = vpop.f32.mrf.mxu2 }
 0x1cd   : > { %803 = vmatmul.msk.f32.vlgmr.msra.gmra.mxu3 %vm463_vm3, %v487_v32 }
 0x1d4   : > { %v490_v33 = vpop.f32.mrf.mxu2 }
 0x1d5   : > { %804 = vmatmul.msk.f32.gmra.mxu3 %vm463_vm3, %v490_v33 }
 0x250   : > { %v518_v34 = vpop.f32.mrf.mxu3 }
 0x251   : > { %v519_v35 = vadd.f32 0.5, %v518_v34 }
 0x253   : > { %v524_v36 = vfloor.f32 %v519_v35 }
 0x255   : > { %v526_v38 = vmax.f32 %v524_v36, 0.0 }
 0x257   : > { %v528_v41 = vmin.f32 %v526_v38, 255.0 }
 0x258   : > { %v521_v37 = vpop.f32.mrf.mxu3 }
 0x259   : > { %v522_v39 = vadd.f32 0.5, %v521_v37  ;;  %v543_v44 = vrot.slane %v528_v41, 7  ;;  %v553_v50 = vmul.f32 %v552_v45, %v528_v41 }
 0x25b   : > { %v525_v40 = vfloor.f32 %v522_v39 }
 0x25d   : > { %v527_v42 = vmax.f32 %v525_v40, 0.0 }
 0x25f   : > { %v529_v43 = vmin.f32 %v527_v42, 255.0 }
 0x261   : > { %v539_v46 = vrot.slane %v529_v43, 7  ;;  %v554_v51 = vmul.f32 %v552_v45, %v529_v43 }
 0x263   : > { %v547_v48 = vsel %vm542_vm4, %v539_v46, %v543_v44  ;;  %v544_v49 = vsel %vm542_vm4, %v543_v44, %v539_v46 }
 0x264   : > { %v549_v52 = vmul.f32 %v548_v47, %v547_v48  ;;  %v550_v53 = vmul.f32 %v548_v47, %v544_v49 }
 0x266   : > { %v555_v54 = vadd.f32 %v553_v50, %v549_v52  ;;  %v556_v55 = vadd.f32 %v554_v51, %v550_v53 }
 0x268   : > { %559 = vrot.lane.b32.xlu1 %v555_v54, %s1088_s4  ;;  %561 = vrot.lane.b32.xlu0 %v556_v55, %s1088_s4  ;;  %v579_v3 = vmul.f32 %v578_v61, %v555_v54  ;;  %v580_v5 = vmul.f32 %v578_v61, %v556_v55  ;;  %s358_s4 = scalar_lea.vmem [#allocation10], %s793_s29 }
 0x269   : > { %s660_s11 = sshll.u32 %s358_s4, 4  ;;  %s661_s11 = int_to_ptr.vmem [resolvable:$true] %s660_s11 }
 0x270   : > { %565 = vrot.lane.b32.xlu1 %v555_v54, %s1089_s24  ;;  %567 = vrot.lane.b32.xlu0 %v556_v55, %s1089_s24  ;;  %s813_s24 = sshll.u32 %s1166_s0, 2  ;;  %s1028_s0 = scalar_lea.hbm %s1307_s8, 20 }
 0x271   : > { %s659_s10 = scalar_lea.hbm %s1307_s8, %s813_s24 }
 0x272   : > { %s662_s12 = sshll.u32 %s659_s10, 4  ;;  %s663_s12 = int_to_ptr.hbm [resolvable:$true] %s662_s12 }
 0x273   : > { %s1022_s19 = sshra.s32 %s663_s12, 4  ;;  %s1023_s19 = int_to_ptr.hbm [resolvable:$true] %s1022_s19 }
 0x274   : > { %s1024_s20 = scalar_lea.hbm %s1023_s19, 4  ;;  %p1029_p7 = scmp.lt.s32.totalorder %s1023_s19, %s1307_s8 }
 0x275   : > { %p1025_p2 = scmp.ne.s32.totalorder %s1023_s19, %s1024_s20  ;;  %p1030_p8 = scmp.lt.s32.totalorder %s1028_s0, %s1024_s20 }
 0x277   : > { %p1026_p3 = pnand %p1025_p2, %p1183_p5  ;;  %p1031_p9 = por %p1030_p8, %p1029_p7 }
 0x279   : > { %p1027_p4 = pneg %p1026_p3 }
 0x27b   : > { %p1032_p10 = pnand %p1031_p9, %p1027_p4 }
 0x2da   : > { %v560_v58 = vpop.permute.xlu1 %559  ;;  %v562_v59 = vpop.permute.xlu0 %561 }
 0x2e2   : > { %v566_v62 = vpop.permute.xlu1 %565  ;;  %v568_v63 = vpop.permute.xlu0 %567 }
 0x2e3   : > { %v572_v0 = vsel %vm571_vm5, %v560_v58, %v566_v62  ;;  %v573_v1 = vsel %vm571_vm5, %v562_v59, %v568_v63 }
 0x2e4   : > { %v575_v2 = vmul.f32 %v574_v60, %v572_v0  ;;  %v576_v4 = vmul.f32 %v574_v60, %v573_v1 }
 0x2e6   : > { %v581_v6 = vadd.f32 %v579_v3, %v575_v2  ;;  %v582_v7 = vadd.f32 %v580_v5, %v576_v4 }
 0x2e8   : > { %vm819_vm6 = vcmp.lt.s32.totalorder %v581_v6, 0  ;;  %v820_v8 = vceil.f32 %v581_v6  ;;  %v821_v9 = vfloor.f32 %v581_v6  ;;  %vm824_vm7 = vcmp.lt.s32.totalorder %v582_v7, 0  ;;  %610 = vmatpush.msrb.mxu2 %v582_v7 }
 0x2e9   : > { %v825_v11 = vceil.f32 %v582_v7  ;;  %v826_v12 = vfloor.f32 %v582_v7 }
 0x2ea   : > { %v822_v13 = vsel %vm819_vm6, %v820_v8, %v821_v9  ;;  %611 = vmatpush.msrb.mxu2 %v581_v6 }
 0x2eb   : > { %v823_v14 = vcvt.f32.s32 %v822_v13  ;;  %v827_v15 = vsel %vm824_vm7, %v825_v11, %v826_v12  ;;  %806 = vmatmul.msk.f32.vlgmr.msrb.gmra.mxu2 %vm463_vm3, %v592_v10 }
 0x2ec   : > { %v828_v16 = vcvt.f32.s32 %v827_v15 }
 0x2ed   : > { %v585_v17 = vpack.c.b16 %v823_v14, %v823_v14 }
 0x2ee   : > { %v587_v18 = vpack.c.b16 %v828_v16, %v828_v16 }
 0x2ef   : > { %v586_v19 = vpack.c.b8 %v585_v17, %v585_v17 }
 0x2f0   : > { %v588_v20 = vpack.c.b8 %v587_v18, %v587_v18 }
 0x2f1   : > { %590 = vst.msk [vmem:[%s358_s4] sm:$0x3] %vm589_vm8, %v586_v19 }
 0x2f2   : > { %591 = vst.msk [vmem:[%s358_s4 + $0x2] sm:$0x3] %vm589_vm8, %v588_v20 }
 0x36e   : > { %v613_v21 = vpop.f32.mrf.mxu2 }
 0x36f   : > { %807 = vmatmul.msk.f32.vlgmr.msrb.gmra.mxu3 %vm463_vm3, %v613_v21 }
 0x370   : > { %1035 = shalt.err (!%p1032_p10)
}
 0x371   : > { %s1090_s28 = smov 32   ;;  %s1091_s4 = smov 2   ;;  %vm641_vm9 = vcmask 9216  }
 0x372   : > { %841 = dma.vmem_to_hbm [thread:$0]  (%p1183_p5), %s661_s11, 64, %s663_s12, %s644_s17, %s1090_s28, %s1090_s28, %s1091_s4  }
 0x373   : > { %s795_s24 = sshll.u32 %s1233_s2, 1 }
 0x374   : > { %s373_s10 = scalar_lea.vmem %s1308_s9, %s795_s24 }
 0x3f2   : > { %v638_v22 = vpop.f32.mrf.mxu3 }
 0x3f3   : > { %642 = vst.msk [vmem:[%s373_s10] sm:$0x3] %vm641_vm9, %v638_v22 }
 0x3f4 PF: > { %p863_p11 = scmp.ge.s32.totalorder %s1080_s16, 2  ;;  %s680_s1 = sand.u32 1, %s1068_s13  }
 0x3f5   : > { %s681_s19 = scalar_lea.sflag [#allocation6], %s680_s1 }
 0x3f6   : > { %p854_p12 = pnand %p863_p11, %p1187_p6 }
 0x3f8   : > { %p855_p13 = pneg %p854_p12 }
 0x3fa   : > { %1063 = dma.done.wait (%p855_p13), %s681_s19, 64  }
 0x3fb   : > { %1065 = vsyncadd (%p855_p13), %s681_s19, 4294967232  ;;  %p30_p5 = scmp.ge.s32.totalorder %s1170_s18, 7   ;;  %s1319_s13 = smov %s1072_s14 }
 0x3fc   : > { %s1320_s14 = smov %s1076_s15  ;;  %s1321_s15 = smov %s1181_s21 }
 0x3fd   : > { %s1322_s16 = smov %s1170_s18  ;;  %32 = sbr.rel (!%p30_p5) target bundleno = 13 (0xd), region = 108 }
 0x402   :  { %694 = vsyncpa [#allocation5], 1 }
 0x403   :  { %696 = vsyncpa [#allocation5 + $0x1], 1 }
 0x404   :  { %697 = vsyncpa [#allocation8], 1 }
 0x405   :  { %698 = vsyncpa [#allocation6], 1 }
 0x406   :  { %700 = vsyncpa [#allocation6 + $0x1], 1 }

</bundles_post_ra>
